<compile_context>
chip_gen: v7x
topology: tpu7x:2x2x1
jax: 0.10.0
libtpu: 0.0.40
codegen_flags: <defaults>
</compile_context>

<pallas_src>
import functools

import jax
import jax.numpy as jnp
from jax.experimental import pallas as pl
from jax.experimental.pallas import tpu as pltpu


# ----------------------------------------------------------------------------
# Compiler params (v7x has only 64 MiB VMEM -> pick a generation-safe limit)
# ----------------------------------------------------------------------------
def _vmem_limit_bytes():
    try:
        cap = int(pltpu.get_tpu_info().vmem_capacity_bytes)
    except Exception:
        cap = 64 * 1024 * 1024  # conservative fallback
    return max(32 * 1024 * 1024, min(cap - 16 * 1024 * 1024, 96 * 1024 * 1024))


_VMEM_LIMIT = _vmem_limit_bytes()
_COMPILER_PARAMS = pltpu.CompilerParams(
    dimension_semantics=("parallel",),      # every grid here is 1-D & independent
    vmem_limit_bytes=_VMEM_LIMIT,
)

_BF16_MIN = float(jnp.finfo(jnp.bfloat16).min)


def _round_up(v, m):
    return ((v + m - 1) // m) * m


# ----------------------------------------------------------------------------
# Pallas kernels
# ----------------------------------------------------------------------------
def _matmul_bias_act_kernel(x_ref, w_ref, b_ref, o_ref, *, relu):
    """(tm, K)bf16 @ (K, Cout)bf16 -> f32 acc -> + bias -> optional ReLU."""
    acc = jnp.dot(x_ref[...], w_ref[...], preferred_element_type=jnp.float32)
    y = acc + b_ref[...]
    if relu:
        y = jnp.maximum(y, 0.0)
    o_ref[...] = y.astype(o_ref.dtype)


def _basic_block_kernel(*refs, taps1, mo, pitch, stride, has_down, write_off):
    """Fully fused BasicBlock: conv1+BN+ReLU -> VMEM plane -> conv2+BN
    -> (+1x1 downsample | identity) -> ReLU.  One grid step = one image."""
    if has_down:
        (x_ref, m_ref, w1_ref, b1_ref, w2_ref, b2_ref,
         wd_ref, bd_ref, o_ref, z_ref) = refs
    else:
        (x_ref, m_ref, w1_ref, b1_ref, w2_ref, b2_ref, o_ref, z_ref) = refs

    # ---- conv1 (3x3 / stride) + folded-BN bias + ReLU ----------------------
    # 9 direct taps; the shift is a static slice of the *bf16 input*, so only
    # `mo` MXU rows per tap and relayouts touch bf16/Cin data.
    acc1 = None
    for t, (p, off) in enumerate(taps1):
        d = jnp.dot(x_ref[p, off:off + mo, :], w1_ref[t],
                    preferred_element_type=jnp.float32)
        acc1 = d if acc1 is None else acc1 + d
    y1 = jnp.maximum(acc1 + b1_ref[...], 0.0) * m_ref[...]   # zero garbage cols

    # ---- stash conv1 output in a zero-padded VMEM plane (never hits HBM) ---
    z_ref[...] = jnp.zeros_like(z_ref)
    z_ref[write_off:write_off + mo, :] = y1.astype(z_ref.dtype)

    # ---- identity / fused 1x1 downsample (residual never round-trips) -----
    if stride == 2:
        id_plane, id_off = 3, 0                 # parity plane (1,1) == x[2r,2c]
    else:
        id_plane, id_off = 0, pitch + 1         # x itself inside the padded plane
    xi = x_ref[id_plane, id_off:id_off + mo, :]
    if has_down:
        ident = jnp.dot(xi, wd_ref[...], preferred_element_type=jnp.float32)
        ident = ident + bd_ref[...]
    else:
        ident = xi.astype(jnp.float32)

    # ---- conv2 (3x3 / 1) over the VMEM plane + bias + residual + ReLU ------
    acc2 = None
    t = 0
    for dy in range(3):
        for dx in range(3):
            off = write_off + (dy - 1) * pitch + (dx - 1)
            d = jnp.dot(z_ref[off:off + mo, :], w2_ref[t],
                        preferred_element_type=jnp.float32)
            acc2 = d if acc2 is None else acc2 + d
            t += 1
    y2 = jnp.maximum(acc2 + b2_ref[...] + ident, 0.0)
    o_ref[...] = y2.astype(o_ref.dtype)


def _pool_taps_kernel(x_ref, o_ref, *, taps, mo):
    """3x3/2 max-pool via parity-plane taps; bf16 max chain, no f32 casts."""
    out = None
    for p, off in taps:
        v = x_ref[p, off:off + mo, :]
        out = v if out is None else jnp.maximum(out, v)
    o_ref[...] = out.astype(o_ref.dtype)


# ----------------------------------------------------------------------------
# Pallas wrappers
# ----------------------------------------------------------------------------
def _pick_tm(m, k, cout):
    """Largest row tile within a VMEM budget derived from the chip's limit;
    prefers >=2 grid blocks (both v7x cores).  Never returns an unchecked
    full-M tile; caller pads M up to a tile multiple."""
    budget = int(_VMEM_LIMIT * 0.5)

    def bytes_needed(t):
        # double-buffered bf16 in/out tiles + weights + f32 dot result
        return (2 * (t * k * 2) + 2 * (k * cout * 2)
                + 2 * (t * cout * 2) + t * cout * 4)

    cands = [t for t in (2048, 1024, 512, 256, 128, 64, 32, 16, 8)
             if bytes_needed(t) <= budget]
    if not cands:
        return 8
    for t in cands:
        if pl.cdiv(m, t) >= 2:
            return t
    return cands[-1]


def matmul_bias_act(x, w, bias, *, relu):
    """Fused matmul + (BN-folded) bias + optional ReLU (used for the stem)."""
    m, k = x.shape
    cout = w.shape[1]
    tm = _pick_tm(m, k, cout)
    m_pad = _round_up(m, tm)
    if m_pad != m:
        x = jnp.pad(x, ((0, m_pad - m), (0, 0)))
    out = pl.pallas_call(
        functools.partial(_matmul_bias_act_kernel, relu=relu),
        out_shape=jax.ShapeDtypeStruct((m_pad, cout), jnp.bfloat16),
        grid=(m_pad // tm,),
        in_specs=[
            pl.BlockSpec((tm, k), lambda i: (i, 0)),
            pl.BlockSpec((k, cout), lambda i: (0, 0)),
            pl.BlockSpec((1, cout), lambda i: (0, 0)),
        ],
        out_specs=pl.BlockSpec((tm, cout), lambda i: (i, 0)),
        compiler_params=_COMPILER_PARAMS,
    )(x, w, bias)
    return out[:m] if m_pad != m else out


# ----------------------------------------------------------------------------
# Plain-JAX glue: plane construction (layout only), stem im2col, params
# ----------------------------------------------------------------------------
def _conv_planes(x, ksize, stride, pad, pad_value=0.0, min_pitch=0):
    """x: (N,H,W,C) -> planes (N,P,R,C), taps [(plane, row_off)], ho, wo,
    pitch, mo.

    stride 1: one flattened padded image at row pitch `pitch` (a multiple of 8,
      >= W+2*pad and >= min_pitch); tap (dy,dx) -> offset dy*pitch + dx.
    stride 2: four parity planes xp[a::2, b::2] at pitch `pitch`; tap ->
      (plane 2a+b, (dy//2)*pitch + dx//2).
    Output rows are pitched; columns beyond wo are garbage and are masked /
    sliced away by the consumer."""
    n, h, w, c = x.shape
    ho = (h + 2 * pad - ksize) // stride + 1
    wo = (w + 2 * pad - ksize) // stride + 1
    if stride == 1:
        pitch = _round_up(max(w + 2 * pad, min_pitch), 8)
        xp = jnp.pad(x, ((0, 0), (pad, pad), (pad, pitch - w - pad), (0, 0)),
                     constant_values=pad_value)
        hp = h + 2 * pad
        taps = tuple((0, dy * pitch + dx)
                     for dy in range(ksize) for dx in range(ksize))
        planes = xp.reshape(n, 1, hp * pitch, c)
        base_rows = hp * pitch
    elif stride == 2:
        hp, wp = h + 2 * pad, w + 2 * pad
        hs = (hp + 1) // 2
        pitch = _round_up(max((wp + 1) // 2, min_pitch), 8)
        xp = jnp.pad(x, ((0, 0), (pad, pad), (pad, pad), (0, 0)),
                     constant_values=pad_value)
        subs = []
        for a in range(2):
            for b in range(2):
                s = xp[:, a::2, b::2, :]
                s = jnp.pad(
                    s, ((0, 0), (0, hs - s.shape[1]),
                        (0, pitch - s.shape[2]), (0, 0)),
                    constant_values=pad_value)
                subs.append(s.reshape(n, hs * pitch, c))
        planes = jnp.stack(subs, axis=1)                # (N, 4, hs*pitch, C)
        taps = tuple((2 * (dy % 2) + (dx % 2), (dy // 2) * pitch + (dx // 2))
                     for dy in range(ksize) for dx in range(ksize))
        base_rows = hs * pitch
    else:
        raise NotImplementedError("stride must be 1 or 2")
    mo = ho * pitch
    rows = _round_up(max(base_rows, mo + max(off for _, off in taps)), 8)
    if rows > base_rows:
        planes = jnp.pad(planes, ((0, 0), (0, 0), (0, rows - base_rows), (0, 0)),
                         constant_values=pad_value)
    return planes, taps, ho, wo, pitch, mo


def _im2col(x, k, stride, pad):
    """Stem-only im2col (Cin padded to 4, K=196).  Patches in bf16."""
    n, h, w, c = x.shape
    xp = jnp.pad(x, ((0, 0), (pad, pad), (pad, pad), (0, 0)))
    ho = (h + 2 * pad - k) // stride + 1
    wo = (w + 2 * pad - k) // stride + 1
    cols = []
    for dy in range(k):
        for dx in range(k):
            patch = jax.lax.slice(
                xp, (0, dy, dx, 0),
                (n, dy + (ho - 1) * stride + 1, dx + (wo - 1) * stride + 1, c),
                (1, stride, stride, 1))
            cols.append(patch)
    patches = jnp.concatenate(cols, axis=-1)            # (N, Ho, Wo, k*k*C)
    return patches.reshape(n * ho * wo, k * k * c), ho, wo


def _init_conv_bn(key, cin, cout, k, *, cin_pad=None):
    """Conv (no bias) + BN(eval) with the BN scale folded into the weights."""
    k1, k2, k3, k4, k5 = jax.random.split(key, 5)
    w = jax.random.normal(k1, (k, k, cin, cout), jnp.float32)
    w = w * (1.0 / float(k * k * cin) ** 0.5)
    gamma = 1.0 + 0.1 * jax.random.normal(k2, (cout,), jnp.float32)
    beta = 0.1 * jax.random.normal(k3, (cout,), jnp.float32)
    mean = 0.1 * jax.random.normal(k4, (cout,), jnp.float32)
    var = jnp.abs(jax.random.normal(k5, (cout,), jnp.float32)) + 1.0
    scale = gamma / jnp.sqrt(var + 1e-5)
    bias = beta - mean * scale
    w = w * scale                                       # fold BN scale per Cout
    if cin_pad is not None and cin_pad > cin:           # align stem contraction
        w = jnp.pad(w, ((0, 0), (0, 0), (0, cin_pad - cin), (0, 0)))
        cin = cin_pad
    if k == 1:
        w_out = w.reshape(cin, cout)                    # 1x1: plain matmul
    elif k == 3:
        w_out = w.reshape(9, cin, cout)                 # tap-major [dy*3+dx]
    else:
        w_out = w.reshape(k * k * cin, cout)            # stem im2col [dy,dx,c]
    return {"w": w_out.astype(jnp.bfloat16),
            "b": bias.reshape(1, cout).astype(jnp.float32),
            "k": k}


def init_resnet18_params(key):
    keys = iter(jax.random.split(key, 32))
    params = {"stem": _init_conv_bn(next(keys), 3, 64, 7, cin_pad=4)}

    def block(cin, cout, stride):
        b = {"conv1": _init_conv_bn(next(keys), cin, cout, 3),
             "conv2": _init_conv_bn(next(keys), cout, cout, 3),
             "down": None, "stride": stride}
        if stride != 1 or cin != cout:
            b["down"] = _init_conv_bn(next(keys), cin, cout, 1)
        return b

    params["layer1"] = [block(64, 64, 1), block(64, 64, 1)]
    params["layer2"] = [block(64, 128, 2), block(128, 128, 1)]
    params["layer3"] = [block(128, 256, 2), block(256, 256, 1)]
    params["layer4"] = [block(256, 512, 2), block(512, 512, 1)]
    return params


# ----------------------------------------------------------------------------
# Forward pass
# ----------------------------------------------------------------------------
def _stem_conv(x, p):
    # TODO(synk): gather the 7x7 patches inside the kernel instead of
    #             materializing the im2col matrix in HBM.
    n = x.shape[0]
    patches, ho, wo = _im2col(x, 7, 2, 3)
    out = matmul_bias_act(patches, p["w"], p["b"], relu=True)
    return out.reshape(n, ho, wo, -1)


def _maxpool3x3_s2(x):
    n, _, _, c = x.shape
    planes, taps, ho, wo, pitch, mo = _conv_planes(x, 3, 2, 1,
                                                   pad_value=_BF16_MIN)
    nplanes, rows = planes.shape[1], planes.shape[2]
    out = pl.pallas_call(
        functools.partial(_pool_taps_kernel, taps=taps, mo=mo),
        out_shape=jax.ShapeDtypeStruct((n, mo, c), x.dtype),
        grid=(n,),
        in_specs=[pl.BlockSpec((None, nplanes, rows, c), lambda i: (i, 0, 0, 0))],
        out_specs=pl.BlockSpec((None, mo, c), lambda i: (i, 0, 0)),
        compiler_params=_COMPILER_PARAMS,
    )(planes)
    return out.reshape(n, ho, pitch, c)[:, :, :wo, :]


def _basic_block(x, p):
    """One fused pallas_call per BasicBlock; grid iterates over batch."""
    stride = p["stride"]
    n, h, w, cin = x.shape
    cout = p["conv1"]["w"].shape[-1]
    min_pitch = ((w - 1) // stride + 1) + 2     # conv2 needs pitch >= wo + 2
    planes, taps1, ho, wo, pitch, mo = _conv_planes(
        x, 3, stride, 1, min_pitch=min_pitch)
    nplanes, rows = planes.shape[1], planes.shape[2]

    write_off = pitch + 8                       # sublane-aligned VMEM stash
    rows_s = _round_up(2 * pitch + 9 + mo, 8)   # conv2 plane incl. halo
    mask = (jnp.arange(mo) % pitch < wo).astype(jnp.float32).reshape(mo, 1)

    has_down = p["down"] is not None
    args = [planes, mask, p["conv1"]["w"], p["conv1"]["b"],
            p["conv2"]["w"], p["conv2"]["b"]]
    in_specs = [
        pl.BlockSpec((None, nplanes, rows, cin), lambda i: (i, 0, 0, 0)),
        pl.BlockSpec((mo, 1), lambda i: (0, 0)),
        pl.BlockSpec((9, cin, cout), lambda i: (0, 0, 0)),
        pl.BlockSpec((1, cout), lambda i: (0, 0)),
        pl.BlockSpec((9, cout, cout), lambda i: (0, 0, 0)),
        pl.BlockSpec((1, cout), lambda i: (0, 0)),
    ]
    if has_down:
        args += [p["down"]["w"], p["down"]["b"]]
        in_specs += [pl.BlockSpec((cin, cout), lambda i: (0, 0)),
                     pl.BlockSpec((1, cout), lambda i: (0, 0))]

    # TODO(synk): add a row-chunk grid axis (with 1-row halo) for large H*W so
    #             the per-step working set fits v7x's 64 MiB VMEM.
    out = pl.pallas_call(
        functools.partial(_basic_block_kernel, taps1=taps1, mo=mo, pitch=pitch,
                          stride=stride, has_down=has_down,
                          write_off=write_off),
        out_shape=jax.ShapeDtypeStruct((n, mo, cout), jnp.bfloat16),
        grid=(n,),
        in_specs=in_specs,
        out_specs=pl.BlockSpec((None, mo, cout), lambda i: (i, 0, 0)),
        scratch_shapes=[pltpu.VMEM((rows_s, cout), jnp.bfloat16)],
        compiler_params=_COMPILER_PARAMS,
    )(*args)
    return out.reshape(n, ho, pitch, cout)[:, :, :wo, :]


def efficientnet_extractor_forward(x_nchw, params):
    """Returns [reduction_2, reduction_4] == [result[1], result[3]], NCHW f32."""
    x = jnp.transpose(x_nchw, (0, 2, 3, 1)).astype(jnp.bfloat16)   # NHWC bf16
    x = jnp.pad(x, ((0, 0), (0, 0), (0, 0), (0, 1)))               # Cin 3 -> 4

    # stem: 7x7/2 conv + folded-BN bias + ReLU, then 3x3/2 max-pool
    x = _stem_conv(x, params["stem"])
    x = _maxpool3x3_s2(x)

    feats = []
    for lname in ("layer1", "layer2", "layer3", "layer4"):
        for blk in params[lname]:
            x = _basic_block(x, blk)
        feats.append(x)

    return [
        jnp.transpose(feats[1], (0, 3, 1, 2)).astype(jnp.float32),
        jnp.transpose(feats[3], (0, 3, 1, 2)).astype(jnp.float32),
    ]


# ----------------------------------------------------------------------------
if __name__ == "__main__":
    key = jax.random.PRNGKey(0)
    kp, kx = jax.random.split(key)
    params = init_resnet18_params(kp)

    # small input: batch=2, channels=3 (RGB), 32x32 spatial
    x = jax.random.normal(kx, (2, 3, 32, 32), jnp.float32)

    outs = efficientnet_extractor_forward(x, params)
    for o in outs:
        jax.block_until_ready(o)

    assert outs[0].shape == (2, 128, 4, 4), outs[0].shape   # reduction_2
    assert outs[1].shape == (2, 512, 1, 1), outs[1].shape   # reduction_4
    assert all(bool(jnp.isfinite(o).all()) for o in outs)
    print("KERNEL_OK")
</pallas_src>

<mosaic_0001>
module attributes {stable_mosaic.version = 11 : i64} {
  func.func @_matmul_bias_act_kernel(%arg0: i32, %arg1: memref<256x196xbf16, #tpu.memory_space<vmem>>, %arg2: memref<196x64xbf16, #tpu.memory_space<vmem>>, %arg3: memref<1x64xf32, #tpu.memory_space<vmem>>, %arg4: memref<256x64xbf16, #tpu.memory_space<vmem>>) attributes {dimension_semantics = [#tpu.dimension_semantics<parallel>], iteration_bounds = array<i64: 2>, scalar_prefetch = 0 : i64, scratch_operands = 0 : i64, tpu.core_type = #tpu.core_type<tc>, window_params = [{transform_indices = @transform_0, window_bounds = array<i64: 256, 196>}, {pipeline_mode = #tpu.pipeline_mode<synchronous>, transform_indices = @transform_1, window_bounds = array<i64: 196, 64>}, {pipeline_mode = #tpu.pipeline_mode<synchronous>, transform_indices = @transform_2, window_bounds = array<i64: 1, 64>}, {transform_indices = @transform_3, window_bounds = array<i64: 256, 64>}]} {
    %c0 = arith.constant 0 : index
    %c0_0 = arith.constant 0 : index
    %0 = vector.load %arg1[%c0, %c0_0] : memref<256x196xbf16, #tpu.memory_space<vmem>>, vector<256x196xbf16>
    %c0_1 = arith.constant 0 : index
    %c0_2 = arith.constant 0 : index
    %1 = vector.load %arg2[%c0_1, %c0_2] : memref<196x64xbf16, #tpu.memory_space<vmem>>, vector<196x64xbf16>
    %cst = arith.constant dense<0.000000e+00> : vector<256x64xf32>
    %2 = tpu.matmul %0, %1, %cst {dimension_numbers = #tpu.dot_dimension_numbers<[1], [0], [0], [1], [0, 0, 1, 1], [], []>} : vector<256x196xbf16>, vector<196x64xbf16>, vector<256x64xf32> -> vector<256x64xf32>
    %c0_3 = arith.constant 0 : index
    %c0_4 = arith.constant 0 : index
    %3 = vector.load %arg3[%c0_3, %c0_4] : memref<1x64xf32, #tpu.memory_space<vmem>>, vector<1x64xf32>
    %4 = vector.broadcast %3 : vector<1x64xf32> to vector<256x64xf32>
    %5 = arith.addf %2, %4 : vector<256x64xf32>
    %cst_5 = arith.constant 0.000000e+00 : f32
    %6 = vector.broadcast %cst_5 : f32 to vector<256x64xf32>
    %7 = arith.maximumf %5, %6 : vector<256x64xf32>
    %8 = arith.truncf %7 : vector<256x64xf32> to vector<256x64xbf16>
    %c0_6 = arith.constant 0 : index
    %c0_7 = arith.constant 0 : index
    %9 = vector.load %arg4[%c0_6, %c0_7] : memref<256x64xbf16, #tpu.memory_space<vmem>>, vector<256x64xbf16>
    tpu.vector_store %arg4[%c0_6, %c0_7], %8 {strides = array<i32>} : memref<256x64xbf16, #tpu.memory_space<vmem>>, vector<256x64xbf16>,
    return
  }
  func.func @transform_0(%arg0: i32) -> (i32, i32) {
    %c0_i32 = arith.constant 0 : i32
    %c0_i32_0 = arith.constant 0 : i32
    return %arg0, %c0_i32 : i32, i32
  }
  func.func @transform_1(%arg0: i32) -> (i32, i32) {
    %c0_i32 = arith.constant 0 : i32
    %c0_i32_0 = arith.constant 0 : i32
    %c0_i32_1 = arith.constant 0 : i32
    return %c0_i32, %c0_i32_0 : i32, i32
  }
  func.func @transform_2(%arg0: i32) -> (i32, i32) {
    %c0_i32 = arith.constant 0 : i32
    %c0_i32_0 = arith.constant 0 : i32
    %c0_i32_1 = arith.constant 0 : i32
    return %c0_i32, %c0_i32_0 : i32, i32
  }
  func.func @transform_3(%arg0: i32) -> (i32, i32) {
    %c0_i32 = arith.constant 0 : i32
    %c0_i32_0 = arith.constant 0 : i32
    return %arg0, %c0_i32 : i32, i32
  }
}

</mosaic_0001>

<bundles_post_ra>
// kernel: tpu_custom_call.1
= control target key start
LH: loop header
LB: loop body
LE: loop exit
PB: predicated region body
PF: predicated region fallthrough
CT: control target
= control target key end

     0   :  { %s1188_s12 = smov 0   ;;  %s1427_s0 = inlined_call_operand.vmem [shape: bf16[512,196], index: 0, kind: input, shape index: {}]   ;;  %s1428_s1 = inlined_call_operand.vmem [shape: bf16[196,64], index: 1, kind: input, shape index: {}]   ;;  %s1429_s2 = inlined_call_operand.vmem [shape: f32[1,64], index: 2, kind: input, shape index: {}]   ;;  %s1430_s3 = inlined_call_operand.vmem [shape: bf16[512,64], index: 3, kind: output, shape index: {}]  }
   0x1 LB: > { %s924_s13 = sadd.s32 4294967295, %s1165_s12   ;;  %p928_p0 = scmp.ge.s32.totalorder %s1165_s12, 1  ;;  %s1165_s12 = sphi %s1188_s12, %s13_s12  }
   0x2   : > { %p139_p1 = scmp.lt.s32.totalorder %s1165_s12, 3 }
   0x4   : > { %p140_p2 = pnand %p928_p0, %p139_p1 }
   0x5   : > { %v1098_v0 = vld [vmem:[%s1428_s1] sm:$0xff] (!%p140_p2)   ;;  %v1167_v1 = vmov (!%p140_p2), 0   ;;  %v1099_v2 = vld [vmem:[%s1428_s1 + $0x8] sm:$0xff] (!%p140_p2)   ;;  %s929_s18 = sshll.u32 (!%p140_p2), %s924_s13, 5  ;;  %v1100_v3 = vld [vmem:[%s1428_s1 + $0x10] sm:$0xff] (!%p140_p2)   ;;  %vm461_vm0 = vcmask (!%p140_p2), 556032  }
   0x6   : > { %143 = sbr.rel (%p140_p2) target bundleno = 335 (0x14f), region = 32  ;;  %514 = vmatprep.subr.bf16.mxu0 (!%p140_p2), %v1167_v1  ;;  %1063 = vmatprep.subr.bf16.mxu1 (!%p140_p2), %v1167_v1  ;;  %p165_p3 = scmp.lt.s32.totalorder (!%p140_p2), %s929_s18, 63  ;;  %v1101_v4 = vld [vmem:[%s1428_s1 + $0x18] sm:$0xff] (!%p140_p2)   ;;  %v1102_v6 = vld [vmem:[%s1428_s1 + $0x20] sm:$0xff] (!%p140_p2)   ;;  %v1103_v8 = vld [vmem:[%s1428_s1 + $0x28] sm:$0xff] (!%p140_p2)   ;;  %vm510_vm1 = vcmask (!%p140_p2), 1041408  }
   0x7   : > { %515 = vmatpush1.bf16.msra.mxu0 (!%p140_p2), %v1098_v0  ;;  %1076 = vmatpush1.bf16.msra.mxu1 (!%p140_p2), %v1098_v0  ;;  %v1104_v9 = vld [vmem:[%s1428_s1 + $0x30] sm:$0xff] (!%p140_p2)   ;;  %v1105_v10 = vld [vmem:[%s1428_s1 + $0x38] sm:$0xff] (!%p140_p2)   ;;  %v1106_v11 = vld [vmem:[%s1428_s1 + $0x40] sm:$0xff] (!%p140_p2)   ;;  %vm835_vm2 = vcmask (!%p140_p2), 519168  }
   0x8   : > { %516 = vmatprep.subr.bf16.mxu0 (!%p140_p2), %v1167_v1  ;;  %1064 = vmatprep.subr.bf16.mxu1 (!%p140_p2), %v1167_v1  ;;  %v1107_v12 = vld [vmem:[%s1428_s1 + $0x48] sm:$0xff] (!%p140_p2)   ;;  %v1108_v13 = vld [vmem:[%s1428_s1 + $0x50] sm:$0xff] (!%p140_p2)   ;;  %v1109_v14 = vld [vmem:[%s1428_s1 + $0x58] sm:$0xff] (!%p140_p2)  }
   0x9   : > { %v1110_v15 = vld [vmem:[%s1428_s1 + $0x60] ss:$0 sps:$4 sm:$0x33] (!%p140_p2)  }
   0xa   : > { %v512_v16 = vsel (!%p140_p2), %vm510_vm1, %v1110_v15, 0  ;;  %v1320_v47 = vld [vmem:[%s1429_s2] ss:$0 sm:$0xff] (!%p140_p2) }
   0xb   : > { %517 = vmatpush1.bf16.msra.mxu0 (!%p140_p2), %v1099_v2  ;;  %1077 = vmatpush1.bf16.msra.mxu1 (!%p140_p2), %v1099_v2 }
   0xc   : > { %518 = vmatprep.subr.bf16.mxu0 (!%p140_p2), %v1167_v1  ;;  %1065 = vmatprep.subr.bf16.mxu1 (!%p140_p2), %v1167_v1 }
   0xd   : > { %s1432_s18 = smov (!%p165_p3, %s929_s18), 63 }
   0xe   : > { %s1030_s21 = sshll.u32 %s1432_s18, 3  ;;  %s933_s22 = sshll.u32 %s1432_s18, 2 }
   0xf   : > { %519 = vmatpush1.bf16.msra.mxu0 %v1100_v3  ;;  %1078 = vmatpush1.bf16.msra.mxu1 %v1100_v3  ;;  %s1220_s26 = scalar_lea.vmem %s1427_s0, %s1030_s21  ;;  %s1330_s18 = scalar_lea.vmem %s1430_s3, %s933_s22 }
  0x10   : > { %520 = vmatprep.subr.bf16.mxu0 %v1167_v1  ;;  %1066 = vmatprep.subr.bf16.mxu1 %v1167_v1  ;;  %v1113_v5 = vld [vmem:[%s1220_s26 + $0x4] ss:$8 sps:$4 sm:$0xff]   ;;  %v1111_v17 = vld [vmem:[%s1220_s26] ss:$8 sps:$4 sm:$0xff]   ;;  %v1117_v19 = vld [vmem:[%s1220_s26 + $0x14] ss:$8 sps:$4 sm:$0xff]  }
  0x11   : > { %v1116_v7 = vld [vmem:[%s1220_s26 + $0x84] ss:$8 sps:$4 sm:$0xff]   ;;  %980 = vmatprep.mubr.msk.bf16.mxu0 %vm461_vm0, %v1113_v5  ;;  %v1114_v18 = vld [vmem:[%s1220_s26 + $0x80] ss:$8 sps:$4 sm:$0xff]   ;;  %v1119_v20 = vld [vmem:[%s1220_s26 + $0x94] ss:$8 sps:$4 sm:$0xff]  }
  0x12   : > { %988 = vmatprep.mubr.msk.bf16.mxu1 %vm461_vm0, %v1116_v7  ;;  %v1121_v21 = vld [vmem:[%s1220_s26 + $0x10] ss:$8 sps:$4 sm:$0xff]   ;;  %v1123_v23 = vld [vmem:[%s1220_s26 + $0x24] ss:$8 sps:$4 sm:$0xff]   ;;  %v1127_v25 = vld [vmem:[%s1220_s26 + $0x20] ss:$8 sps:$4 sm:$0xff]  }
  0x13   : > { %521 = vmatpush1.bf16.msra.mxu0 %v1101_v4  ;;  %1079 = vmatpush1.bf16.msra.mxu1 %v1101_v4  ;;  %v1122_v22 = vld [vmem:[%s1220_s26 + $0x90] ss:$8 sps:$4 sm:$0xff]   ;;  %v1125_v24 = vld [vmem:[%s1220_s26 + $0xa4] ss:$8 sps:$4 sm:$0xff]   ;;  %v1128_v26 = vld [vmem:[%s1220_s26 + $0xa0] ss:$8 sps:$4 sm:$0xff]  }
  0x14   : > { %522 = vmatprep.subr.bf16.mxu0 %v1167_v1  ;;  %1067 = vmatprep.subr.bf16.mxu1 %v1167_v1  ;;  %v1129_v27 = vld [vmem:[%s1220_s26 + $0x34] ss:$8 sps:$4 sm:$0xff]   ;;  %v1133_v29 = vld [vmem:[%s1220_s26 + $0x30] ss:$8 sps:$4 sm:$0xff]   ;;  %v1135_v31 = vld [vmem:[%s1220_s26 + $0x44] ss:$8 sps:$4 sm:$0xff]  }
  0x15   : > { %v1131_v28 = vld [vmem:[%s1220_s26 + $0xb4] ss:$8 sps:$4 sm:$0xff]   ;;  %v1134_v30 = vld [vmem:[%s1220_s26 + $0xb0] ss:$8 sps:$4 sm:$0xff]   ;;  %v1137_v32 = vld [vmem:[%s1220_s26 + $0xc4] ss:$8 sps:$4 sm:$0xff]  }
  0x16   : > { %v1139_v33 = vld [vmem:[%s1220_s26 + $0x40] ss:$8 sps:$4 sm:$0xff]   ;;  %v1141_v35 = vld [vmem:[%s1220_s26 + $0x54] ss:$8 sps:$4 sm:$0xff]   ;;  %v1145_v37 = vld [vmem:[%s1220_s26 + $0x50] ss:$8 sps:$4 sm:$0xff]  }
  0x17   : > { %523 = vmatpush1.bf16.msra.mxu0 %v1102_v6  ;;  %1080 = vmatpush1.bf16.msra.mxu1 %v1102_v6  ;;  %v1140_v34 = vld [vmem:[%s1220_s26 + $0xc0] ss:$8 sps:$4 sm:$0xff]   ;;  %v1143_v36 = vld [vmem:[%s1220_s26 + $0xd4] ss:$8 sps:$4 sm:$0xff]   ;;  %v1146_v38 = vld [vmem:[%s1220_s26 + $0xd0] ss:$8 sps:$4 sm:$0xff]  }
  0x18   : > { %524 = vmatprep.subr.bf16.mxu0 %v1167_v1  ;;  %1068 = vmatprep.subr.bf16.mxu1 %v1167_v1  ;;  %v1147_v39 = vld [vmem:[%s1220_s26 + $0x64] ss:$8 sps:$4 sm:$0xff]   ;;  %v1151_v41 = vld [vmem:[%s1220_s26 + $0x60] ss:$8 sps:$4 sm:$0xff]   ;;  %v1153_v43 = vld [vmem:[%s1220_s26 + $0x74] ss:$8 sps:$4 sm:$0xff]  }
  0x19   : > { %v1149_v40 = vld [vmem:[%s1220_s26 + $0xe4] ss:$8 sps:$4 sm:$0xff]   ;;  %v1152_v42 = vld [vmem:[%s1220_s26 + $0xe0] ss:$8 sps:$4 sm:$0xff]   ;;  %v1155_v44 = vld [vmem:[%s1220_s26 + $0xf4] ss:$8 sps:$4 sm:$0xff]  }
  0x1a   : > { %v1157_v45 = vld [vmem:[%s1220_s26 + $0x70] ss:$8 sps:$4 sm:$0xff]  }
  0x1b   : > { %525 = vmatpush1.bf16.msra.mxu0 %v1103_v8  ;;  %1081 = vmatpush1.bf16.msra.mxu1 %v1103_v8  ;;  %v1158_v46 = vld [vmem:[%s1220_s26 + $0xf0] ss:$8 sps:$4 sm:$0xff]  }
  0x1c   : > { %526 = vmatprep.subr.bf16.mxu0 %v1167_v1  ;;  %1069 = vmatprep.subr.bf16.mxu1 %v1167_v1 }
  0x1f   : > { %527 = vmatpush1.bf16.msra.mxu0 %v1104_v9  ;;  %1082 = vmatpush1.bf16.msra.mxu1 %v1104_v9 }
  0x20   : > { %528 = vmatprep.subr.bf16.mxu0 %v1167_v1  ;;  %1070 = vmatprep.subr.bf16.mxu1 %v1167_v1 }
  0x23   : > { %529 = vmatpush1.bf16.msra.mxu0 %v1105_v10  ;;  %1083 = vmatpush1.bf16.msra.mxu1 %v1105_v10 }
  0x24   : > { %530 = vmatprep.subr.bf16.mxu0 %v1167_v1  ;;  %1071 = vmatprep.subr.bf16.mxu1 %v1167_v1 }
  0x27   : > { %531 = vmatpush1.bf16.msra.mxu0 %v1106_v11  ;;  %1084 = vmatpush1.bf16.msra.mxu1 %v1106_v11 }
  0x28   : > { %532 = vmatprep.subr.bf16.mxu0 %v1167_v1  ;;  %1072 = vmatprep.subr.bf16.mxu1 %v1167_v1 }
  0x2b   : > { %533 = vmatpush1.bf16.msra.mxu0 %v1107_v12  ;;  %1085 = vmatpush1.bf16.msra.mxu1 %v1107_v12 }
  0x2c   : > { %534 = vmatprep.subr.bf16.mxu0 %v1167_v1  ;;  %1073 = vmatprep.subr.bf16.mxu1 %v1167_v1 }
  0x2f   : > { %535 = vmatpush1.bf16.msra.mxu0 %v1108_v13  ;;  %1086 = vmatpush1.bf16.msra.mxu1 %v1108_v13 }
  0x30   : > { %536 = vmatprep.subr.bf16.mxu0 %v1167_v1  ;;  %1074 = vmatprep.subr.bf16.mxu1 %v1167_v1 }
  0x33   : > { %537 = vmatpush1.bf16.msra.mxu0 %v1109_v14  ;;  %1087 = vmatpush1.bf16.msra.mxu1 %v1109_v14 }
  0x34   : > { %538 = vmatprep.subr.bf16.mxu0 %v1167_v1  ;;  %1075 = vmatprep.subr.bf16.mxu1 %v1167_v1 }
  0x37   : > { %539 = vmatpush1.bf16.msra.mxu0 %v512_v16  ;;  %1088 = vmatpush1.bf16.msra.mxu1 %v512_v16 }
  0x3a   : > { %547 = vmatmul.mubr.bf16.vlgmr.msra.gmra.mrb[0].mxu0 %v1111_v17  ;;  %611 = vmatmul.mubr.bf16.vlgmr.msra.gmra.mrb[0].mxu1 %v1114_v18 }
  0x3b   : > { %981 = vmatprep.mubr.msk.bf16.mxu0 %vm461_vm0, %v1117_v19  ;;  %989 = vmatprep.mubr.msk.bf16.mxu1 %vm461_vm0, %v1119_v20 }
  0x42   : > { %555 = vmatmul.mubr.bf16.gmra.mrb[4].mxu0 %v1121_v21  ;;  %619 = vmatmul.mubr.bf16.gmra.mrb[4].mxu1 %v1122_v22 }
  0x43   : > { %982 = vmatprep.mubr.msk.bf16.mxu0 %vm461_vm0, %v1123_v23  ;;  %990 = vmatprep.mubr.msk.bf16.mxu1 %vm461_vm0, %v1125_v24 }
  0x4a   : > { %563 = vmatmul.mubr.bf16.gmra.mrb[8].mxu0 %v1127_v25  ;;  %627 = vmatmul.mubr.bf16.gmra.mrb[8].mxu1 %v1128_v26 }
  0x4b   : > { %983 = vmatprep.mubr.msk.bf16.mxu0 %vm461_vm0, %v1129_v27  ;;  %991 = vmatprep.mubr.msk.bf16.mxu1 %vm461_vm0, %v1131_v28 }
  0x52   : > { %571 = vmatmul.mubr.bf16.gmra.mrb[12].mxu0 %v1133_v29  ;;  %635 = vmatmul.mubr.bf16.gmra.mrb[12].mxu1 %v1134_v30 }
  0x53   : > { %984 = vmatprep.mubr.msk.bf16.mxu0 %vm461_vm0, %v1135_v31  ;;  %992 = vmatprep.mubr.msk.bf16.mxu1 %vm461_vm0, %v1137_v32 }
  0x5a   : > { %579 = vmatmul.mubr.bf16.gmra.mrb[16].mxu0 %v1139_v33  ;;  %643 = vmatmul.mubr.bf16.gmra.mrb[16].mxu1 %v1140_v34 }
  0x5b   : > { %985 = vmatprep.mubr.msk.bf16.mxu0 %vm461_vm0, %v1141_v35  ;;  %993 = vmatprep.mubr.msk.bf16.mxu1 %vm461_vm0, %v1143_v36 }
  0x62   : > { %587 = vmatmul.mubr.bf16.gmra.mrb[20].mxu0 %v1145_v37  ;;  %651 = vmatmul.mubr.bf16.gmra.mrb[20].mxu1 %v1146_v38 }
  0x63   : > { %986 = vmatprep.mubr.msk.bf16.mxu0 %vm461_vm0, %v1147_v39  ;;  %994 = vmatprep.mubr.msk.bf16.mxu1 %vm461_vm0, %v1149_v40 }
  0x6a   : > { %595 = vmatmul.mubr.bf16.gmra.mrb[24].mxu0 %v1151_v41  ;;  %659 = vmatmul.mubr.bf16.gmra.mrb[24].mxu1 %v1152_v42 }
  0x6b   : > { %987 = vmatprep.mubr.msk.bf16.mxu0 %vm461_vm0, %v1153_v43  ;;  %995 = vmatprep.mubr.msk.bf16.mxu1 %vm461_vm0, %v1155_v44 }
  0x72   : > { %603 = vmatmul.mubr.bf16.gmra.mrb[28].mxu0 %v1157_v45  ;;  %667 = vmatmul.mubr.bf16.gmra.mrb[28].mxu1 %v1158_v46 }
 0x10d   : > { %v548_v48 = vpop.f32.mrb[0].mxu0  ;;  %v612_v49 = vpop.f32.mrb[0].mxu1 }
 0x10e   : > { %v549_v50 = vadd.f32 %v1320_v47, %v548_v48  ;;  %v613_v51 = vadd.f32 %v1320_v47, %v612_v49  ;;  %v550_v52 = vpop.f32.mrb[1].mxu0  ;;  %v614_v53 = vpop.f32.mrb[1].mxu1 }
 0x10f   : > { %v551_v54 = vpop.f32.mrb[2].mxu0  ;;  %v615_v55 = vpop.f32.mrb[2].mxu1 }
 0x110   : > { %v675_v56 = vmax.f32 %v549_v50, 0.0  ;;  %v691_v57 = vmax.f32 %v613_v51, 0.0  ;;  %v552_v58 = vadd.f32 %v1320_v47, %v551_v54  ;;  %v616_v59 = vadd.f32 %v1320_v47, %v615_v55  ;;  %v553_v60 = vpop.f32.mrb[3].mxu0  ;;  %v617_v61 = vpop.f32.mrb[3].mxu1 }
 0x112   : > { %v1031_v62 = vpack.c.bf16 %v675_v56, %v675_v56  ;;  %v1047_v63 = vpack.c.bf16 %v691_v57, %v691_v57  ;;  %v676_v0 = vmax.f32 %v552_v58, 0.0  ;;  %v692_v1 = vmax.f32 %v616_v59, 0.0 }
 0x114   : > { %836 = vst.msk [vmem:[%s1330_s18] sm:$0xf] %vm835_vm2, %v1031_v62  ;;  %852 = vst.msk [vmem:[%s1330_s18 + $0x40] sm:$0xf] %vm835_vm2, %v1047_v63  ;;  %v1032_v2 = vpack.c.bf16 %v676_v0, %v676_v0  ;;  %v1048_v3 = vpack.c.bf16 %v692_v1, %v692_v1 }
 0x115   : > { %v556_v4 = vpop.f32.mrb[4].mxu0  ;;  %v620_v5 = vpop.f32.mrb[4].mxu1 }
 0x116   : > { %837 = vst.msk [vmem:[%s1330_s18 + $0x4] sm:$0xf] %vm835_vm2, %v1032_v2  ;;  %853 = vst.msk [vmem:[%s1330_s18 + $0x44] sm:$0xf] %vm835_vm2, %v1048_v3  ;;  %v557_v6 = vadd.f32 %v1320_v47, %v556_v4  ;;  %v621_v7 = vadd.f32 %v1320_v47, %v620_v5  ;;  %v558_v8 = vpop.f32.mrb[5].mxu0  ;;  %v622_v9 = vpop.f32.mrb[5].mxu1 }
 0x117   : > { %v559_v10 = vpop.f32.mrb[6].mxu0  ;;  %v623_v11 = vpop.f32.mrb[6].mxu1 }
 0x118   : > { %v677_v12 = vmax.f32 %v557_v6, 0.0  ;;  %v693_v13 = vmax.f32 %v621_v7, 0.0  ;;  %v560_v14 = vadd.f32 %v1320_v47, %v559_v10  ;;  %v624_v15 = vadd.f32 %v1320_v47, %v623_v11  ;;  %v561_v16 = vpop.f32.mrb[7].mxu0  ;;  %v625_v17 = vpop.f32.mrb[7].mxu1 }
 0x11a   : > { %v1033_v18 = vpack.c.bf16 %v677_v12, %v677_v12  ;;  %v1049_v19 = vpack.c.bf16 %v693_v13, %v693_v13  ;;  %v678_v20 = vmax.f32 %v560_v14, 0.0  ;;  %v694_v21 = vmax.f32 %v624_v15, 0.0 }
 0x11c   : > { %838 = vst.msk [vmem:[%s1330_s18 + $0x8] sm:$0xf] %vm835_vm2, %v1033_v18  ;;  %854 = vst.msk [vmem:[%s1330_s18 + $0x48] sm:$0xf] %vm835_vm2, %v1049_v19  ;;  %v1034_v22 = vpack.c.bf16 %v678_v20, %v678_v20  ;;  %v1050_v23 = vpack.c.bf16 %v694_v21, %v694_v21 }
 0x11d   : > { %v564_v24 = vpop.f32.mrb[8].mxu0  ;;  %v628_v25 = vpop.f32.mrb[8].mxu1 }
 0x11e   : > { %839 = vst.msk [vmem:[%s1330_s18 + $0xc] sm:$0xf] %vm835_vm2, %v1034_v22  ;;  %855 = vst.msk [vmem:[%s1330_s18 + $0x4c] sm:$0xf] %vm835_vm2, %v1050_v23  ;;  %v565_v26 = vadd.f32 %v1320_v47, %v564_v24  ;;  %v629_v27 = vadd.f32 %v1320_v47, %v628_v25  ;;  %v566_v28 = vpop.f32.mrb[9].mxu0  ;;  %v630_v29 = vpop.f32.mrb[9].mxu1 }
 0x11f   : > { %v567_v30 = vpop.f32.mrb[10].mxu0  ;;  %v631_v31 = vpop.f32.mrb[10].mxu1 }
 0x120   : > { %v679_v32 = vmax.f32 %v565_v26, 0.0  ;;  %v695_v33 = vmax.f32 %v629_v27, 0.0  ;;  %v568_v34 = vadd.f32 %v1320_v47, %v567_v30  ;;  %v632_v35 = vadd.f32 %v1320_v47, %v631_v31  ;;  %v569_v36 = vpop.f32.mrb[11].mxu0  ;;  %v633_v37 = vpop.f32.mrb[11].mxu1 }
 0x122   : > { %v1035_v38 = vpack.c.bf16 %v679_v32, %v679_v32  ;;  %v1051_v39 = vpack.c.bf16 %v695_v33, %v695_v33  ;;  %v680_v40 = vmax.f32 %v568_v34, 0.0  ;;  %v696_v41 = vmax.f32 %v632_v35, 0.0 }
 0x124   : > { %840 = vst.msk [vmem:[%s1330_s18 + $0x10] sm:$0xf] %vm835_vm2, %v1035_v38  ;;  %856 = vst.msk [vmem:[%s1330_s18 + $0x50] sm:$0xf] %vm835_vm2, %v1051_v39  ;;  %v1036_v42 = vpack.c.bf16 %v680_v40, %v680_v40  ;;  %v1052_v43 = vpack.c.bf16 %v696_v41, %v696_v41 }
 0x125   : > { %v572_v44 = vpop.f32.mrb[12].mxu0  ;;  %v636_v45 = vpop.f32.mrb[12].mxu1 }
 0x126   : > { %841 = vst.msk [vmem:[%s1330_s18 + $0x14] sm:$0xf] %vm835_vm2, %v1036_v42  ;;  %857 = vst.msk [vmem:[%s1330_s18 + $0x54] sm:$0xf] %vm835_vm2, %v1052_v43  ;;  %v573_v46 = vadd.f32 %v1320_v47, %v572_v44  ;;  %v637_v48 = vadd.f32 %v1320_v47, %v636_v45  ;;  %v574_v49 = vpop.f32.mrb[13].mxu0  ;;  %v638_v50 = vpop.f32.mrb[13].mxu1 }
 0x127   : > { %v575_v51 = vpop.f32.mrb[14].mxu0  ;;  %v639_v52 = vpop.f32.mrb[14].mxu1 }
 0x128   : > { %v681_v53 = vmax.f32 %v573_v46, 0.0  ;;  %v697_v54 = vmax.f32 %v637_v48, 0.0  ;;  %v576_v55 = vadd.f32 %v1320_v47, %v575_v51  ;;  %v640_v56 = vadd.f32 %v1320_v47, %v639_v52  ;;  %v577_v57 = vpop.f32.mrb[15].mxu0  ;;  %v641_v58 = vpop.f32.mrb[15].mxu1 }
 0x12a   : > { %v1037_v59 = vpack.c.bf16 %v681_v53, %v681_v53  ;;  %v1053_v60 = vpack.c.bf16 %v697_v54, %v697_v54  ;;  %v682_v61 = vmax.f32 %v576_v55, 0.0  ;;  %v698_v62 = vmax.f32 %v640_v56, 0.0 }
 0x12c   : > { %842 = vst.msk [vmem:[%s1330_s18 + $0x18] sm:$0xf] %vm835_vm2, %v1037_v59  ;;  %858 = vst.msk [vmem:[%s1330_s18 + $0x58] sm:$0xf] %vm835_vm2, %v1053_v60  ;;  %v1038_v63 = vpack.c.bf16 %v682_v61, %v682_v61  ;;  %v1054_v0 = vpack.c.bf16 %v698_v62, %v698_v62 }
 0x12d   : > { %v580_v1 = vpop.f32.mrb[16].mxu0  ;;  %v644_v2 = vpop.f32.mrb[16].mxu1 }
 0x12e   : > { %843 = vst.msk [vmem:[%s1330_s18 + $0x1c] sm:$0xf] %vm835_vm2, %v1038_v63  ;;  %859 = vst.msk [vmem:[%s1330_s18 + $0x5c] sm:$0xf] %vm835_vm2, %v1054_v0  ;;  %v581_v3 = vadd.f32 %v1320_v47, %v580_v1  ;;  %v645_v4 = vadd.f32 %v1320_v47, %v644_v2  ;;  %v582_v5 = vpop.f32.mrb[17].mxu0  ;;  %v646_v6 = vpop.f32.mrb[17].mxu1 }
 0x12f   : > { %v583_v7 = vpop.f32.mrb[18].mxu0  ;;  %v647_v8 = vpop.f32.mrb[18].mxu1 }
 0x130   : > { %v683_v9 = vmax.f32 %v581_v3, 0.0  ;;  %v699_v10 = vmax.f32 %v645_v4, 0.0  ;;  %v584_v11 = vadd.f32 %v1320_v47, %v583_v7  ;;  %v648_v12 = vadd.f32 %v1320_v47, %v647_v8  ;;  %v585_v13 = vpop.f32.mrb[19].mxu0  ;;  %v649_v14 = vpop.f32.mrb[19].mxu1 }
 0x132   : > { %v1039_v15 = vpack.c.bf16 %v683_v9, %v683_v9  ;;  %v1055_v16 = vpack.c.bf16 %v699_v10, %v699_v10  ;;  %v684_v17 = vmax.f32 %v584_v11, 0.0  ;;  %v700_v18 = vmax.f32 %v648_v12, 0.0 }
 0x134   : > { %844 = vst.msk [vmem:[%s1330_s18 + $0x20] sm:$0xf] %vm835_vm2, %v1039_v15  ;;  %860 = vst.msk [vmem:[%s1330_s18 + $0x60] sm:$0xf] %vm835_vm2, %v1055_v16  ;;  %v1040_v19 = vpack.c.bf16 %v684_v17, %v684_v17  ;;  %v1056_v20 = vpack.c.bf16 %v700_v18, %v700_v18 }
 0x135   : > { %v588_v21 = vpop.f32.mrb[20].mxu0  ;;  %v652_v22 = vpop.f32.mrb[20].mxu1 }
 0x136   : > { %845 = vst.msk [vmem:[%s1330_s18 + $0x24] sm:$0xf] %vm835_vm2, %v1040_v19  ;;  %861 = vst.msk [vmem:[%s1330_s18 + $0x64] sm:$0xf] %vm835_vm2, %v1056_v20  ;;  %v589_v23 = vadd.f32 %v1320_v47, %v588_v21  ;;  %v653_v24 = vadd.f32 %v1320_v47, %v652_v22  ;;  %v590_v25 = vpop.f32.mrb[21].mxu0  ;;  %v654_v26 = vpop.f32.mrb[21].mxu1 }
 0x137   : > { %v591_v27 = vpop.f32.mrb[22].mxu0  ;;  %v655_v28 = vpop.f32.mrb[22].mxu1 }
 0x138   : > { %v685_v29 = vmax.f32 %v589_v23, 0.0  ;;  %v701_v30 = vmax.f32 %v653_v24, 0.0  ;;  %v592_v31 = vadd.f32 %v1320_v47, %v591_v27  ;;  %v656_v32 = vadd.f32 %v1320_v47, %v655_v28  ;;  %v593_v33 = vpop.f32.mrb[23].mxu0  ;;  %v657_v34 = vpop.f32.mrb[23].mxu1 }
 0x13a   : > { %v1041_v35 = vpack.c.bf16 %v685_v29, %v685_v29  ;;  %v1057_v36 = vpack.c.bf16 %v701_v30, %v701_v30  ;;  %v686_v37 = vmax.f32 %v592_v31, 0.0  ;;  %v702_v38 = vmax.f32 %v656_v32, 0.0 }
 0x13c   : > { %846 = vst.msk [vmem:[%s1330_s18 + $0x28] sm:$0xf] %vm835_vm2, %v1041_v35  ;;  %862 = vst.msk [vmem:[%s1330_s18 + $0x68] sm:$0xf] %vm835_vm2, %v1057_v36  ;;  %v1042_v39 = vpack.c.bf16 %v686_v37, %v686_v37  ;;  %v1058_v40 = vpack.c.bf16 %v702_v38, %v702_v38 }
 0x13d   : > { %v596_v41 = vpop.f32.mrb[24].mxu0  ;;  %v660_v42 = vpop.f32.mrb[24].mxu1 }
 0x13e   : > { %847 = vst.msk [vmem:[%s1330_s18 + $0x2c] sm:$0xf] %vm835_vm2, %v1042_v39  ;;  %863 = vst.msk [vmem:[%s1330_s18 + $0x6c] sm:$0xf] %vm835_vm2, %v1058_v40  ;;  %v597_v43 = vadd.f32 %v1320_v47, %v596_v41  ;;  %v661_v44 = vadd.f32 %v1320_v47, %v660_v42  ;;  %v598_v45 = vpop.f32.mrb[25].mxu0  ;;  %v662_v46 = vpop.f32.mrb[25].mxu1 }
 0x13f   : > { %v599_v48 = vpop.f32.mrb[26].mxu0  ;;  %v663_v49 = vpop.f32.mrb[26].mxu1 }
 0x140   : > { %v687_v50 = vmax.f32 %v597_v43, 0.0  ;;  %v703_v51 = vmax.f32 %v661_v44, 0.0  ;;  %v600_v52 = vadd.f32 %v1320_v47, %v599_v48  ;;  %v664_v53 = vadd.f32 %v1320_v47, %v663_v49  ;;  %v601_v54 = vpop.f32.mrb[27].mxu0  ;;  %v665_v55 = vpop.f32.mrb[27].mxu1 }
 0x142   : > { %v1043_v56 = vpack.c.bf16 %v687_v50, %v687_v50  ;;  %v1059_v57 = vpack.c.bf16 %v703_v51, %v703_v51  ;;  %v688_v58 = vmax.f32 %v600_v52, 0.0  ;;  %v704_v59 = vmax.f32 %v664_v53, 0.0 }
 0x144   : > { %848 = vst.msk [vmem:[%s1330_s18 + $0x30] sm:$0xf] %vm835_vm2, %v1043_v56  ;;  %864 = vst.msk [vmem:[%s1330_s18 + $0x70] sm:$0xf] %vm835_vm2, %v1059_v57  ;;  %v1044_v60 = vpack.c.bf16 %v688_v58, %v688_v58  ;;  %v1060_v61 = vpack.c.bf16 %v704_v59, %v704_v59 }
 0x145   : > { %v604_v62 = vpop.f32.mrb[28].mxu0  ;;  %v668_v63 = vpop.f32.mrb[28].mxu1 }
 0x146   : > { %849 = vst.msk [vmem:[%s1330_s18 + $0x34] sm:$0xf] %vm835_vm2, %v1044_v60  ;;  %865 = vst.msk [vmem:[%s1330_s18 + $0x74] sm:$0xf] %vm835_vm2, %v1060_v61  ;;  %v605_v0 = vadd.f32 %v1320_v47, %v604_v62  ;;  %v669_v1 = vadd.f32 %v1320_v47, %v668_v63  ;;  %v606_v2 = vpop.f32.mrb[29].mxu0  ;;  %v670_v3 = vpop.f32.mrb[29].mxu1 }
 0x147   : > { %v607_v4 = vpop.f32.mrb[30].mxu0  ;;  %v671_v5 = vpop.f32.mrb[30].mxu1 }
 0x148   : > { %v689_v6 = vmax.f32 %v605_v0, 0.0  ;;  %v705_v7 = vmax.f32 %v669_v1, 0.0  ;;  %v608_v8 = vadd.f32 %v1320_v47, %v607_v4  ;;  %v672_v9 = vadd.f32 %v1320_v47, %v671_v5  ;;  %v609_v10 = vpop.f32.mrb[31].mxu0  ;;  %v673_v11 = vpop.f32.mrb[31].mxu1 }
 0x14a   : > { %v1045_v12 = vpack.c.bf16 %v689_v6, %v689_v6  ;;  %v1061_v13 = vpack.c.bf16 %v705_v7, %v705_v7  ;;  %v690_v14 = vmax.f32 %v608_v8, 0.0  ;;  %v706_v15 = vmax.f32 %v672_v9, 0.0 }
 0x14c   : > { %850 = vst.msk [vmem:[%s1330_s18 + $0x38] sm:$0xf] %vm835_vm2, %v1045_v12  ;;  %866 = vst.msk [vmem:[%s1330_s18 + $0x78] sm:$0xf] %vm835_vm2, %v1061_v13  ;;  %v1046_v16 = vpack.c.bf16 %v690_v14, %v690_v14  ;;  %v1062_v17 = vpack.c.bf16 %v706_v15, %v706_v15 }
 0x14e   : > { %851 = vst.msk [vmem:[%s1330_s18 + $0x3c] sm:$0xf] %vm835_vm2, %v1046_v16  ;;  %867 = vst.msk [vmem:[%s1330_s18 + $0x7c] sm:$0xf] %vm835_vm2, %v1062_v17 }
 0x14f PF: > { %s13_s12 = sadd.s32 1, %s1165_s12  }
 0x150   : > { %p10_p4 = scmp.ge.s32.totalorder %s13_s12, 4  }
 0x152   :  { %12 = sbr.rel (!%p10_p4) target bundleno = 1 (0x1), region = 62 }

</bundles_post_ra>
